<compile_context>
chip_gen: v5e
topology: v5e:2x2
jax: 0.10.0
libtpu: 0.0.40
codegen_flags: <defaults>
</compile_context>

<pallas_src>
import functools

import jax
import jax.numpy as jnp
from jax.experimental import pallas as pl
from jax.experimental.pallas import tpu as pltpu


def _round_up(x, m):
    return ((x + m - 1) // m) * m


# ----------------------------- kernels ---------------------------------------

def _sae_fwd_resident_kernel(x_ref, w_enc_ref, b_enc_ref, w_dec_ref, b_dec_ref,
                             recon_ref, feat_ref):
    """Weights fully VMEM-resident: 1-D grid over batch tiles, no K loop."""
    # Encoder: [tb, D_in] @ [D_in, D_h] + b_enc -> ReLU (f32 epilogue).
    pre = jnp.dot(x_ref[...], w_enc_ref[...],
                  preferred_element_type=jnp.float32) + b_enc_ref[...]
    feats = jnp.maximum(pre, 0.0)
    feat_ref[...] = feats.astype(feat_ref.dtype)

    # Decoder: one dot + bias, written straight to the output tile.
    recon = jnp.dot(feats.astype(w_dec_ref.dtype), w_dec_ref[...],
                    preferred_element_type=jnp.float32) + b_dec_ref[...]
    recon_ref[...] = recon.astype(recon_ref.dtype)


def _sae_fwd_streamed_kernel(x_ref, w_enc_ref, b_enc_ref, w_dec_ref, b_dec_ref,
                             recon_ref, feat_ref, acc_ref):
    """Streamed hidden dim: grid (batch [parallel], hidden tiles [arbitrary])."""
    j = pl.program_id(1)                     # hidden-dim tile index (reduction)

    pre = jnp.dot(x_ref[...], w_enc_ref[...],
                  preferred_element_type=jnp.float32) + b_enc_ref[...]
    feats = jnp.maximum(pre, 0.0)
    feat_ref[...] = feats.astype(feat_ref.dtype)

    @pl.when(j == 0)
    def _():
        acc_ref[...] = jnp.zeros_like(acc_ref)

    acc_ref[...] += jnp.dot(feats.astype(w_dec_ref.dtype), w_dec_ref[...],
                            preferred_element_type=jnp.float32)

    @pl.when(j == pl.num_programs(1) - 1)
    def _():
        # Bias add hoisted out of the K loop.
        recon_ref[...] = (acc_ref[...] + b_dec_ref[...]).astype(recon_ref.dtype)


# ----------------------------- wrapper ----------------------------------------

@functools.partial(
    jax.jit,
    static_argnames=("block_b", "block_h", "compute_dtype", "out_dtype",
                     "feat_dtype", "force_streamed"))
def sae_forward(x, w_enc, b_enc, w_dec, b_dec, *,
                block_b=None, block_h=None,
                compute_dtype=jnp.bfloat16, out_dtype=None,
                feat_dtype=jnp.bfloat16, force_streamed=False):
    """Pallas SAE forward. Returns (reconstructed, features)."""
    B, D_in = x.shape
    D_in_w, D_h = w_enc.shape
    assert D_in_w == D_in and w_dec.shape == (D_h, D_in)
    out_dtype = x.dtype if out_dtype is None else out_dtype
    feat_dtype = out_dtype if feat_dtype is None else feat_dtype

    # Lane / MXU alignment.
    assert D_in % 128 == 0, "n_input_features must be a multiple of 128"
    assert D_h % 128 == 0, "n_learned_features must be a multiple of 128"

    cd = jnp.dtype(compute_dtype).itemsize
    od = jnp.dtype(out_dtype).itemsize
    fd = jnp.dtype(feat_dtype).itemsize
    min_b = 16 if cd < 4 else 8              # bf16 sublane packing needs >= 16 rows

    # Generation-aware VMEM budget: ~80% of physical VMEM (v7x: ~51 MiB,
    # v5e/v6e: ~102 MiB), leaving headroom for compiler-internal scratch.
    try:
        phys_vmem = int(pltpu.get_tpu_info().vmem_capacity_bytes)
    except Exception:
        phys_vmem = 64 << 20                 # conservative (v7x-sized) fallback
    vmem_cap = int(phys_vmem * 0.8)

    def vmem_est(bb, bh, resident):
        # Conservatively count double buffers for every block.
        est = 2 * (bb * D_in * cd            # x tile
                   + D_in * bh * cd          # w_enc tile
                   + 8 * bh * 4              # b_enc (sublane-padded)
                   + bh * D_in * cd          # w_dec tile
                   + 8 * D_in * 4            # b_dec
                   + bb * D_in * od          # recon tile
                   + bb * bh * fd)           # features tile
        if not resident:
            est += bb * D_in * 4             # f32 accumulator scratch
        return est

    # --- batch tile selection (block_b is the weight-reuse factor) ------------
    if block_b is None:
        block_b = 512
    block_b = _round_up(max(min_b, min(block_b, _round_up(B, min_b))), min_b)
    # Keep >= 2 batch tiles when possible so dimension_semantics=("parallel",...)
    # can actually shard across both v7x TensorCores.
    if pl.cdiv(B, block_b) < 2 and B > min_b:
        block_b = max(min_b, _round_up(pl.cdiv(B, 2), min_b))

    # --- path / hidden tile selection ------------------------------------------
    resident = (not force_streamed) and (block_h is None or block_h == D_h)
    if resident:
        bb = block_b
        while bb > min_b and vmem_est(bb, D_h, True) > vmem_cap:
            bb = max(min_b, _round_up(bb // 2, min_b))
        if vmem_est(bb, D_h, True) <= vmem_cap:
            block_b, block_h = bb, D_h
        else:
            resident = False

    if not resident:
        if block_h is None:
            block_h = 128
            for cand in (2048, 1024, 512, 256, 128):
                if D_h % cand == 0 and vmem_est(block_b, cand, False) <= vmem_cap:
                    block_h = cand
                    break
        assert D_h % block_h == 0 and block_h % 128 == 0, \
            "D_h must be divisible by block_h, and block_h a multiple of 128"
        while block_b > min_b and vmem_est(block_b, block_h, False) > vmem_cap:
            block_b = max(min_b, _round_up(block_b // 2, min_b))

    B_pad = _round_up(B, block_b)
    if B_pad != B:                            # only pad ragged batches
        x = jnp.pad(x, ((0, B_pad - B), (0, 0)))

    # Cast only when dtypes actually differ (callers should cache bf16 weights).
    x_c = x if x.dtype == compute_dtype else x.astype(compute_dtype)
    w_enc_c = w_enc if w_enc.dtype == compute_dtype else w_enc.astype(compute_dtype)
    w_dec_c = w_dec if w_dec.dtype == compute_dtype else w_dec.astype(compute_dtype)
    b_enc_c = b_enc.reshape(1, D_h).astype(jnp.float32)
    b_dec_c = b_dec.reshape(1, D_in).astype(jnp.float32)

    vmem_limit = min(vmem_cap,
                     max(int(vmem_est(block_b, block_h, resident) * 1.25)
                         + (2 << 20), 16 << 20))

    out_shape = (jax.ShapeDtypeStruct((B_pad, D_in), out_dtype),
                 jax.ShapeDtypeStruct((B_pad, D_h), feat_dtype))

    if resident:
        grid = (B_pad // block_b,)
        recon, feats = pl.pallas_call(
            _sae_fwd_resident_kernel,
            out_shape=out_shape,
            grid_spec=pltpu.PrefetchScalarGridSpec(
                num_scalar_prefetch=0,
                grid=grid,
                in_specs=[
                    pl.BlockSpec((block_b, D_in), lambda i: (i, 0)),   # x tile
                    pl.BlockSpec((D_in, D_h), lambda i: (0, 0)),       # W_enc (resident)
                    pl.BlockSpec((1, D_h), lambda i: (0, 0)),          # b_enc
                    pl.BlockSpec((D_h, D_in), lambda i: (0, 0)),       # W_dec (resident)
                    pl.BlockSpec((1, D_in), lambda i: (0, 0)),         # b_dec
                ],
                out_specs=[
                    pl.BlockSpec((block_b, D_in), lambda i: (i, 0)),   # reconstructed
                    pl.BlockSpec((block_b, D_h), lambda i: (i, 0)),    # features
                ],
            ),
            compiler_params=pltpu.CompilerParams(
                dimension_semantics=("parallel",),
                vmem_limit_bytes=vmem_limit,
            ),
        )(x_c, w_enc_c, b_enc_c, w_dec_c, b_dec_c)
    else:
        grid = (B_pad // block_b, D_h // block_h)   # (batch: parallel, hidden: K)
        recon, feats = pl.pallas_call(
            _sae_fwd_streamed_kernel,
            out_shape=out_shape,
            grid_spec=pltpu.PrefetchScalarGridSpec(
                num_scalar_prefetch=0,
                grid=grid,
                in_specs=[
                    pl.BlockSpec((block_b, D_in), lambda i, j: (i, 0)),    # x tile
                    pl.BlockSpec((D_in, block_h), lambda i, j: (0, j)),    # W_enc tile
                    pl.BlockSpec((1, block_h), lambda i, j: (0, j)),       # b_enc tile
                    pl.BlockSpec((block_h, D_in), lambda i, j: (j, 0)),    # W_dec tile
                    pl.BlockSpec((1, D_in), lambda i, j: (0, 0)),          # b_dec
                ],
                out_specs=[
                    pl.BlockSpec((block_b, D_in), lambda i, j: (i, 0)),    # reconstructed
                    pl.BlockSpec((block_b, block_h), lambda i, j: (i, j)), # features
                ],
                scratch_shapes=[pltpu.VMEM((block_b, D_in), jnp.float32)], # recon acc
            ),
            compiler_params=pltpu.CompilerParams(
                dimension_semantics=("parallel", "arbitrary"),
                vmem_limit_bytes=vmem_limit,
            ),
        )(x_c, w_enc_c, b_enc_c, w_dec_c, b_dec_c)

    if B_pad != B:
        recon = recon[:B]
        feats = feats[:B]
    return recon, feats


# ----------------------------- references / init ------------------------------

def xavier_uniform(key, fan_out, fan_in, dtype=jnp.float32):
    """torch.nn.init.xavier_uniform_ for a [fan_out, fan_in] Linear weight."""
    limit = jnp.sqrt(6.0 / (fan_in + fan_out))
    return jax.random.uniform(key, (fan_out, fan_in), dtype=dtype,
                              minval=-limit, maxval=limit)


def reference_forward_bf16(x, w_enc_t, b_enc, w_dec_t, b_dec):
    """Same math as the kernel: bf16 MXU operands, f32 accumulation."""
    pre = jnp.dot(x.astype(jnp.bfloat16), w_enc_t.astype(jnp.bfloat16),
                  preferred_element_type=jnp.float32) + b_enc
    feats = jnp.maximum(pre, 0.0)
    recon = jnp.dot(feats.astype(jnp.bfloat16), w_dec_t.astype(jnp.bfloat16),
                    preferred_element_type=jnp.float32) + b_dec
    return recon, feats


def reference_forward_f32(x, w_enc_t, b_enc, w_dec_t, b_dec):
    feats = jnp.maximum(x @ w_enc_t + b_enc, 0.0)
    recon = feats @ w_dec_t + b_dec
    return recon, feats


if __name__ == "__main__":
    # Config: n_input_features=128, n_learned_features=512, batch=64.
    B, D_in, D_h = 64, 128, 512

    key = jax.random.PRNGKey(0)
    k_x, k_enc, k_dec = jax.random.split(key, 3)

    # Deterministic parameter init (Xavier uniform weights, zero biases),
    # mirroring SparseAutoencoder._initialize_weights.
    enc_w = xavier_uniform(k_enc, D_h, D_in)    # torch encoder.weight: [D_h, D_in]
    dec_w = xavier_uniform(k_dec, D_in, D_h)    # torch decoder.weight: [D_in, D_h]
    b_enc = jnp.zeros((D_h,), jnp.float32)
    b_dec = jnp.zeros((D_in,), jnp.float32)

    # Caller-cached, pre-transposed, pre-cast (bf16) weights — no per-call casts.
    w_enc_t = enc_w.T.astype(jnp.bfloat16)      # [D_in, D_h]
    w_dec_t = dec_w.T.astype(jnp.bfloat16)      # [D_h, D_in]

    x = jax.random.normal(k_x, (B, D_in), jnp.float32)

    # 1) Default path: weights fully VMEM-resident, 1-D batch grid (2 tiles so
    #    both v7x TensorCores are used), bf16 features output.
    recon, feats = sae_forward(x, w_enc_t, b_enc, w_dec_t, b_dec)
    recon = jax.block_until_ready(recon)
    feats = jax.block_until_ready(feats)
    assert recon.shape == (B, D_in) and recon.dtype == x.dtype
    assert feats.shape == (B, D_h) and feats.dtype == jnp.bfloat16

    recon_ref, feats_ref = reference_forward_bf16(x, enc_w.T, b_enc, dec_w.T, b_dec)
    assert jnp.allclose(recon, recon_ref, atol=2e-3, rtol=2e-3)
    assert jnp.allclose(feats.astype(jnp.float32), feats_ref, atol=1e-2, rtol=1e-2)

    # 2) Streamed-K fallback (large-D_h regime), f32 features, to exercise the
    #    reduction path with the pl.when init/finalize accumulator.
    recon_s, feats_s = sae_forward(x, w_enc_t, b_enc, w_dec_t, b_dec,
                                   block_b=32, block_h=256,
                                   feat_dtype=jnp.float32, force_streamed=True)
    recon_s = jax.block_until_ready(recon_s)
    feats_s = jax.block_until_ready(feats_s)
    assert recon_s.shape == (B, D_in) and feats_s.shape == (B, D_h)
    assert jnp.allclose(recon_s, recon_ref, atol=2e-3, rtol=2e-3)
    assert jnp.allclose(feats_s, feats_ref, atol=2e-3, rtol=2e-3)

    # Loose sanity check against full-f32 math (bf16 operand rounding only).
    recon_f32, feats_f32 = reference_forward_f32(x, enc_w.T, b_enc, dec_w.T, b_dec)
    assert jnp.allclose(recon, recon_f32, atol=5e-2, rtol=5e-2)
    assert jnp.allclose(feats.astype(jnp.float32), feats_f32, atol=5e-2, rtol=5e-2)

    print("KERNEL_OK")
</pallas_src>

<mosaic_0001>
module attributes {stable_mosaic.version = 11 : i64} {
  func.func @_sae_fwd_resident_kernel(%arg0: i32, %arg1: memref<32x128xbf16, #tpu.memory_space<vmem>>, %arg2: memref<128x512xbf16, #tpu.memory_space<vmem>>, %arg3: memref<1x512xf32, #tpu.memory_space<vmem>>, %arg4: memref<512x128xbf16, #tpu.memory_space<vmem>>, %arg5: memref<1x128xf32, #tpu.memory_space<vmem>>, %arg6: memref<32x128xf32, #tpu.memory_space<vmem>>, %arg7: memref<32x512xbf16, #tpu.memory_space<vmem>>) attributes {dimension_semantics = [#tpu.dimension_semantics<parallel>], iteration_bounds = array<i64: 2>, scalar_prefetch = 0 : i64, scratch_operands = 0 : i64, tpu.core_type = #tpu.core_type<tc>, window_params = [{transform_indices = @transform_0, window_bounds = array<i64: 32, 128>}, {pipeline_mode = #tpu.pipeline_mode<synchronous>, transform_indices = @transform_1, window_bounds = array<i64: 128, 512>}, {pipeline_mode = #tpu.pipeline_mode<synchronous>, transform_indices = @transform_2, window_bounds = array<i64: 1, 512>}, {pipeline_mode = #tpu.pipeline_mode<synchronous>, transform_indices = @transform_3, window_bounds = array<i64: 512, 128>}, {pipeline_mode = #tpu.pipeline_mode<synchronous>, transform_indices = @transform_4, window_bounds = array<i64: 1, 128>}, {transform_indices = @transform_5, window_bounds = array<i64: 32, 128>}, {transform_indices = @transform_6, window_bounds = array<i64: 32, 512>}]} {
    %c0 = arith.constant 0 : index
    %c0_0 = arith.constant 0 : index
    %0 = vector.load %arg1[%c0, %c0_0] : memref<32x128xbf16, #tpu.memory_space<vmem>>, vector<32x128xbf16>
    %c0_1 = arith.constant 0 : index
    %c0_2 = arith.constant 0 : index
    %1 = vector.load %arg2[%c0_1, %c0_2] : memref<128x512xbf16, #tpu.memory_space<vmem>>, vector<128x512xbf16>
    %cst = arith.constant dense<0.000000e+00> : vector<32x512xf32>
    %2 = tpu.matmul %0, %1, %cst {dimension_numbers = #tpu.dot_dimension_numbers<[1], [0], [0], [1], [0, 0, 1, 1], [], []>} : vector<32x128xbf16>, vector<128x512xbf16>, vector<32x512xf32> -> vector<32x512xf32>
    %c0_3 = arith.constant 0 : index
    %c0_4 = arith.constant 0 : index
    %3 = vector.load %arg3[%c0_3, %c0_4] : memref<1x512xf32, #tpu.memory_space<vmem>>, vector<1x512xf32>
    %4 = vector.broadcast %3 : vector<1x512xf32> to vector<32x512xf32>
    %5 = arith.addf %2, %4 : vector<32x512xf32>
    %cst_5 = arith.constant 0.000000e+00 : f32
    %6 = vector.broadcast %cst_5 : f32 to vector<32x512xf32>
    %7 = arith.maximumf %5, %6 : vector<32x512xf32>
    %8 = arith.truncf %7 : vector<32x512xf32> to vector<32x512xbf16>
    %c0_6 = arith.constant 0 : index
    %c0_7 = arith.constant 0 : index
    %9 = vector.load %arg7[%c0_6, %c0_7] : memref<32x512xbf16, #tpu.memory_space<vmem>>, vector<32x512xbf16>
    tpu.vector_store %arg7[%c0_6, %c0_7], %8 {strides = array<i32>} : memref<32x512xbf16, #tpu.memory_space<vmem>>, vector<32x512xbf16>,
    %10 = arith.truncf %7 : vector<32x512xf32> to vector<32x512xbf16>
    %c0_8 = arith.constant 0 : index
    %c0_9 = arith.constant 0 : index
    %11 = vector.load %arg4[%c0_8, %c0_9] : memref<512x128xbf16, #tpu.memory_space<vmem>>, vector<512x128xbf16>
    %cst_10 = arith.constant dense<0.000000e+00> : vector<32x128xf32>
    %12 = tpu.matmul %10, %11, %cst_10 {dimension_numbers = #tpu.dot_dimension_numbers<[1], [0], [0], [1], [0, 0, 1, 1], [], []>} : vector<32x512xbf16>, vector<512x128xbf16>, vector<32x128xf32> -> vector<32x128xf32>
    %c0_11 = arith.constant 0 : index
    %c0_12 = arith.constant 0 : index
    %13 = vector.load %arg5[%c0_11, %c0_12] : memref<1x128xf32, #tpu.memory_space<vmem>>, vector<1x128xf32>
    %14 = vector.broadcast %13 : vector<1x128xf32> to vector<32x128xf32>
    %15 = arith.addf %12, %14 : vector<32x128xf32>
    %c0_13 = arith.constant 0 : index
    %c0_14 = arith.constant 0 : index
    %16 = vector.load %arg6[%c0_13, %c0_14] : memref<32x128xf32, #tpu.memory_space<vmem>>, vector<32x128xf32>
    tpu.vector_store %arg6[%c0_13, %c0_14], %15 {strides = array<i32>} : memref<32x128xf32, #tpu.memory_space<vmem>>, vector<32x128xf32>,
    return
  }
  func.func @transform_0(%arg0: i32) -> (i32, i32) {
    %c0_i32 = arith.constant 0 : i32
    %c0_i32_0 = arith.constant 0 : i32
    return %arg0, %c0_i32 : i32, i32
  }
  func.func @transform_1(%arg0: i32) -> (i32, i32) {
    %c0_i32 = arith.constant 0 : i32
    %c0_i32_0 = arith.constant 0 : i32
    %c0_i32_1 = arith.constant 0 : i32
    return %c0_i32, %c0_i32_0 : i32, i32
  }
  func.func @transform_2(%arg0: i32) -> (i32, i32) {
    %c0_i32 = arith.constant 0 : i32
    %c0_i32_0 = arith.constant 0 : i32
    %c0_i32_1 = arith.constant 0 : i32
    return %c0_i32, %c0_i32_0 : i32, i32
  }
  func.func @transform_3(%arg0: i32) -> (i32, i32) {
    %c0_i32 = arith.constant 0 : i32
    %c0_i32_0 = arith.constant 0 : i32
    %c0_i32_1 = arith.constant 0 : i32
    return %c0_i32, %c0_i32_0 : i32, i32
  }
  func.func @transform_4(%arg0: i32) -> (i32, i32) {
    %c0_i32 = arith.constant 0 : i32
    %c0_i32_0 = arith.constant 0 : i32
    %c0_i32_1 = arith.constant 0 : i32
    return %c0_i32, %c0_i32_0 : i32, i32
  }
  func.func @transform_5(%arg0: i32) -> (i32, i32) {
    %c0_i32 = arith.constant 0 : i32
    %c0_i32_0 = arith.constant 0 : i32
    return %arg0, %c0_i32 : i32, i32
  }
  func.func @transform_6(%arg0: i32) -> (i32, i32) {
    %c0_i32 = arith.constant 0 : i32
    %c0_i32_0 = arith.constant 0 : i32
    return %arg0, %c0_i32 : i32, i32
  }
}

</mosaic_0001>

<bundles_post_ra>
// kernel: sae_forward.1
= control target key start
LH: loop header
LB: loop body
LE: loop exit
PB: predicated region body
PF: predicated region fallthrough
CT: control target
= control target key end

     0   :  { %12 = vsyncpa [#allocation3], 0  ;;  %s1992_s0 = inlined_call_operand.vmem [shape: bf16[64,128], index: 0, kind: input, shape index: {}]   ;;  %s1993_s1 = inlined_call_operand.hbm [shape: bf16[128,512], index: 1, kind: input, shape index: {}]   ;;  %s1994_s2 = inlined_call_operand.vmem [shape: f32[1,512], index: 2, kind: input, shape index: {}]   ;;  %s1995_s3 = inlined_call_operand.hbm [shape: bf16[512,128], index: 3, kind: input, shape index: {}]   ;;  %s1996_s4 = inlined_call_operand.vmem [shape: f32[1,128], index: 4, kind: input, shape index: {}]   ;;  %s1997_s5 = inlined_call_operand.hbm [shape: f32[64,128], index: 5, kind: output, shape index: {0}]   ;;  %s1998_s6 = inlined_call_operand.hbm [shape: bf16[64,512], index: 6, kind: output, shape index: {1}]  }
   0x1   :  { %13 = vsyncpa [#allocation6], 0 }
   0x2   :  { %14 = vsyncpa [#allocation4], 0 }
   0x3   :  { %16 = vsyncpa [#allocation4 + $0x1], 0 }
   0x4   :  { %17 = vsyncpa [#allocation9], 0 }
   0x5   :  { %19 = vsyncpa [#allocation9 + $0x1], 0  ;;  %s1798_s21 = smov 0   ;;  %s1800_s22 = smov 0  }
   0x6   :  { %s1802_s23 = smov 0   ;;  %s1804_s24 = smov 0  }
   0x7 LB: > { %s1819_s25 = sadd.s32 4294967295, %s1751_s24   ;;  %s1161_s26 = sadd.s32 4294967294, %s1751_s24   ;;  %s1751_s24 = sphi %s1804_s24, %s2006_s24   ;;  %s1747_s23 = sphi %s1802_s23, %s2005_s23   ;;  %s1743_s22 = sphi %s1800_s22, %s2004_s22   ;;  %s1739_s21 = sphi %s1798_s21, %s2003_s21  }
   0x8   : > { %s1823_s27 = sadd.s32 1, %s1751_s24   ;;  %s142_s28 = sadd.s32 1, %s1747_s23 }
   0x9   : > { %s139_s29 = ssub.s32 %s1751_s24, %s1823_s27  ;;  %p152_p0 = scmp.ne.s32.totalorder %s1747_s23, %s1743_s22 }
   0xa   : > { %p140_p1 = scmp.eq.s32.totalorder %s139_s29, 0  ;;  %p153_p2 = scmp.eq.s32.totalorder %s1819_s25, 1 }
   0xb   : > { %p158_p3 = scmp.ne.s32.totalorder %s1743_s22, %s1739_s21  ;;  %p159_p4 = scmp.eq.s32.totalorder %s1161_s26, 1 }
   0xc   : > { %s1834_s30 = scalar_select %p140_p1, %s1747_s23, %s142_s28  }
   0xd   : > { %p1836_p5 = por %p153_p2, %p152_p0  ;;  %p1840_p6 = por %p159_p4, %p158_p3 }
   0xe   : > { %p1162_p7 = scmp.ge.s32.totalorder %s1751_s24, 1  ;;  %p192_p8 = scmp.lt.s32.totalorder %s1751_s24, 3 }
   0xf   : > { %p1541_p9 = scmp.eq.s32.totalorder %s1819_s25, 0  ;;  %s203_s12 = sshll.u32 %s1993_s1, 4  ;;  %s204_s12 = int_to_ptr.hbm [resolvable:$true] %s203_s12 }
  0x10   : > { %p1847_p10 = pnand %p1162_p7, %p192_p8  ;;  %s1753_s13 = smov [#allocation2]  }
  0x11   : > { %s205_s14 = sshll.u32 %s1753_s13, 4  ;;  %s220_s17 = sshll.u32 %s1995_s3, 4  ;;  %s206_s14 = int_to_ptr.vmem [resolvable:$true] %s205_s14  ;;  %s221_s17 = int_to_ptr.hbm [resolvable:$true] %s220_s17 }
  0x12   : > { %p1527_p11 = pneg %p1847_p10  ;;  %s1754_s18 = smov 256  }
  0x13   : > { %s1755_s19 = smov 16   ;;  %s1756_s20 = smov [#allocation5]  }
  0x14   : > { %p1528_p12 = pnand %p1541_p9, %p1527_p11  ;;  %s222_s26 = sshll.u32 %s1756_s20, 4  ;;  %s223_s26 = int_to_ptr.vmem [resolvable:$true] %s222_s26 }
  0x15   : > { %s1757_s28 = smov 64   ;;  %s1758_s29 = smov 4  }
  0x16   : > { %1530 = dma.hbm_to_vmem [thread:$0]  (!%p1528_p12), %s204_s12, 4096, %s206_s14, [#allocation3], %s1754_s18, %s1754_s18, %s1755_s19  }
  0x17   : > { %1533 = dma.hbm_to_vmem [thread:$0]  (!%p1528_p12), %s221_s17, 4096, %s223_s26, [#allocation6], %s1757_s28, %s1757_s28, %s1758_s29  }
  0x18   : > { %250 = sbr.rel (%p1847_p10) target bundleno = 383 (0x17f), region = 40 }
  0x1d   : > { %1722 = dma.done.wait (%p1541_p9), [#allocation3], 4096  }
  0x1e   : > { %1724 = vsyncadd (%p1541_p9), [#allocation3], 4294963200 }
  0x1f   : > { %1726 = dma.done.wait (%p1541_p9), [#allocation6], 4096  }
  0x20   : > { %1728 = vsyncadd (%p1541_p9), [#allocation6], 4294963200  ;;  %v1295_v0 = vld [vmem:[#allocation2 + $0xe0] sm:$0xf]  ;;  %v1478_v1 = vld [vmem:[#allocation2 + $0xec] sm:$0xf0] }
  0x21   : > { %v1476_v2 = vld [vmem:[#allocation2 + $0xe4] sm:$0xf]  ;;  %v1296_v3 = vor.u32 %v1478_v1, %v1295_v0  ;;  %v1297_v4 = vld [vmem:[#allocation2 + $0xf0] sm:$0xf0]  ;;  %v1303_v5 = vld [vmem:[#allocation2 + $0xe8] sm:$0xf] }
  0x22   : > { %v1479_v6 = vld [vmem:[#allocation2 + $0xf4] sm:$0xf0]  ;;  %v1300_v7 = vor.u32 %v1476_v2, %v1297_v4  ;;  %v1477_v9 = vld [vmem:[#allocation2 + $0xec] sm:$0xf]  ;;  %v1305_v10 = vld [vmem:[#allocation2 + $0xf8] sm:$0xf0] }
  0x23   : > { %v1304_v8 = vor.u32 %v1479_v6, %v1303_v5  ;;  %v1279_v11 = vld [vmem:[#allocation2 + $0xc0] sm:$0xf]  ;;  %517 = vmatpush.bf16.msra.mxu0 %v1296_v3  ;;  %v1308_v12 = vor.u32 %v1477_v9, %v1305_v10  ;;  %v1474_v13 = vld [vmem:[#allocation2 + $0xcc] sm:$0xf0]  ;;  %v1472_v14 = vld [vmem:[#allocation2 + $0xc4] sm:$0xf] }
  0x24   : > { %v1281_v15 = vld [vmem:[#allocation2 + $0xd0] sm:$0xf0]  ;;  %536 = vmatpush.bf16.msra.mxu1 %v1300_v7  ;;  %v1280_v16 = vor.u32 %v1474_v13, %v1279_v11  ;;  %v1287_v18 = vld [vmem:[#allocation2 + $0xc8] sm:$0xf]  ;;  %v1475_v19 = vld [vmem:[#allocation2 + $0xd4] sm:$0xf0] }
  0x25   : > { %555 = vmatpush.bf16.msra.mxu2 %v1304_v8  ;;  %v1284_v17 = vor.u32 %v1472_v14, %v1281_v15  ;;  %v1473_v20 = vld [vmem:[#allocation2 + $0xcc] sm:$0xf]  ;;  %574 = vmatpush.bf16.msra.mxu3 %v1308_v12  ;;  %v1288_v21 = vor.u32 %v1475_v19, %v1287_v18  ;;  %v1289_v22 = vld [vmem:[#allocation2 + $0xd8] sm:$0xf0]  ;;  %v1263_v23 = vld [vmem:[#allocation2 + $0xa0] sm:$0xf] }
  0x26   : > { %v1470_v24 = vld [vmem:[#allocation2 + $0xac] sm:$0xf0]  ;;  %v1292_v25 = vor.u32 %v1473_v20, %v1289_v22  ;;  %v1468_v26 = vld [vmem:[#allocation2 + $0xa4] sm:$0xf]  ;;  %v1265_v27 = vld [vmem:[#allocation2 + $0xb0] sm:$0xf0] }
  0x27   : > { %v1271_v28 = vld [vmem:[#allocation2 + $0xa8] sm:$0xf]  ;;  %518 = vmatpush.bf16.msra.mxu0 %v1280_v16  ;;  %v1264_v29 = vor.u32 %v1470_v24, %v1263_v23  ;;  %v1471_v30 = vld [vmem:[#allocation2 + $0xb4] sm:$0xf0]  ;;  %v1469_v31 = vld [vmem:[#allocation2 + $0xac] sm:$0xf]  ;;  %v1268_v33 = vor.u32 %v1468_v26, %v1265_v27 }
  0x28   : > { %v1273_v32 = vld [vmem:[#allocation2 + $0xb8] sm:$0xf0]  ;;  %537 = vmatpush.bf16.msra.mxu1 %v1284_v17  ;;  %v1272_v34 = vor.u32 %v1471_v30, %v1271_v28  ;;  %v1247_v35 = vld [vmem:[#allocation2 + $0x80] sm:$0xf]  ;;  %v1466_v36 = vld [vmem:[#allocation2 + $0x8c] sm:$0xf0] }
  0x29   : > { %556 = vmatpush.bf16.msra.mxu2 %v1288_v21  ;;  %v1464_v37 = vld [vmem:[#allocation2 + $0x84] sm:$0xf]  ;;  %575 = vmatpush.bf16.msra.mxu3 %v1292_v25  ;;  %v1276_v38 = vor.u32 %v1469_v31, %v1273_v32  ;;  %v1249_v39 = vld [vmem:[#allocation2 + $0x90] sm:$0xf0]  ;;  %v1255_v40 = vld [vmem:[#allocation2 + $0x88] sm:$0xf]  ;;  %v1248_v44 = vor.u32 %v1466_v36, %v1247_v35 }
  0x2a   : > { %v1467_v41 = vld [vmem:[#allocation2 + $0x94] sm:$0xf0]  ;;  %v1465_v42 = vld [vmem:[#allocation2 + $0x8c] sm:$0xf]  ;;  %v1257_v43 = vld [vmem:[#allocation2 + $0x98] sm:$0xf0]  ;;  %v1252_v45 = vor.u32 %v1464_v37, %v1249_v39 }
  0x2b   : > { %519 = vmatpush.bf16.msra.mxu0 %v1264_v29  ;;  %s1171_s9 = sshll.u32 %s1819_s25, 2  ;;  %v1256_v46 = vor.u32 %v1467_v41, %v1255_v40  ;;  %v1231_v47 = vld [vmem:[#allocation2 + $0x60] sm:$0xf]  ;;  %v1462_v48 = vld [vmem:[#allocation2 + $0x6c] sm:$0xf0]  ;;  %v1260_v50 = vor.u32 %v1465_v42, %v1257_v43  ;;  %v1487_v32 = vld [vmem:[#allocation5 + $0x38] sm:$0xff] }
  0x2c   : > { %538 = vmatpush.bf16.msra.mxu1 %v1268_v33  ;;  %v1460_v49 = vld [vmem:[#allocation2 + $0x64] sm:$0xf]  ;;  %v1233_v51 = vld [vmem:[#allocation2 + $0x70] sm:$0xf0]  ;;  %v1239_v52 = vld [vmem:[#allocation2 + $0x68] sm:$0xf]  ;;  %v1232_v56 = vor.u32 %v1462_v48, %v1231_v47 }
  0x2d   : > { %557 = vmatpush.bf16.msra.mxu2 %v1272_v34  ;;  %576 = vmatpush.bf16.msra.mxu3 %v1276_v38  ;;  %v1463_v53 = vld [vmem:[#allocation2 + $0x74] sm:$0xf0]  ;;  %v1461_v54 = vld [vmem:[#allocation2 + $0x6c] sm:$0xf]  ;;  %v1241_v55 = vld [vmem:[#allocation2 + $0x78] sm:$0xf0]  ;;  %v1236_v57 = vor.u32 %v1460_v49, %v1233_v51 }
  0x2e   : > { %p1874_p13 = scmp.lt.s32.totalorder %s1171_s9, 7  ;;  %v1240_v58 = vor.u32 %v1463_v53, %v1239_v52  ;;  %v1215_v59 = vld [vmem:[#allocation2 + $0x40] sm:$0xf]  ;;  %v1458_v60 = vld [vmem:[#allocation2 + $0x4c] sm:$0xf0]  ;;  %v1244_v62 = vor.u32 %v1461_v54, %v1241_v55  ;;  %v1495_v34 = vld [vmem:[#allocation5 + $0x78] sm:$0xff] }
  0x2f   : > { %520 = vmatpush.bf16.msra.mxu0 %v1248_v44  ;;  %v1456_v61 = vld [vmem:[#allocation2 + $0x44] sm:$0xf]  ;;  %v1217_v63 = vld [vmem:[#allocation2 + $0x50] sm:$0xf0]  ;;  %v1223_v0 = vld [vmem:[#allocation2 + $0x48] sm:$0xf]  ;;  %v1216_v4 = vor.u32 %v1458_v60, %v1215_v59 }
  0x30   : > { %539 = vmatpush.bf16.msra.mxu1 %v1252_v45  ;;  %v1459_v1 = vld [vmem:[#allocation2 + $0x54] sm:$0xf0]  ;;  %v1457_v2 = vld [vmem:[#allocation2 + $0x4c] sm:$0xf]  ;;  %v1225_v3 = vld [vmem:[#allocation2 + $0x58] sm:$0xf0]  ;;  %v1220_v5 = vor.u32 %v1456_v61, %v1217_v63 }
  0x31   : > { %558 = vmatpush.bf16.msra.mxu2 %v1256_v46  ;;  %577 = vmatpush.bf16.msra.mxu3 %v1260_v50  ;;  %s2008_s9 = smov (!%p1874_p13, %s1171_s9), 7  ;;  %v1224_v6 = vor.u32 %v1459_v1, %v1223_v0  ;;  %v1199_v7 = vld [vmem:[#allocation2 + $0x20] sm:$0xf]  ;;  %v1454_v8 = vld [vmem:[#allocation2 + $0x2c] sm:$0xf0]  ;;  %v1228_v10 = vor.u32 %v1457_v2, %v1225_v3  ;;  %v1503_v35 = vld [vmem:[#allocation5 + $0xb8] sm:$0xff] }
  0x32   : > { %v1452_v9 = vld [vmem:[#allocation2 + $0x24] sm:$0xf]  ;;  %v1201_v11 = vld [vmem:[#allocation2 + $0x30] sm:$0xf0]  ;;  %v1207_v12 = vld [vmem:[#allocation2 + $0x28] sm:$0xf]  ;;  %v1200_v16 = vor.u32 %v1454_v8, %v1199_v7 }
  0x33   : > { %521 = vmatpush.bf16.msra.mxu0 %v1232_v56  ;;  %v1455_v13 = vld [vmem:[#allocation2 + $0x34] sm:$0xf0]  ;;  %v1453_v14 = vld [vmem:[#allocation2 + $0x2c] sm:$0xf]  ;;  %v1209_v15 = vld [vmem:[#allocation2 + $0x38] sm:$0xf0]  ;;  %v1204_v18 = vor.u32 %v1452_v9, %v1201_v11 }
  0x34   : > { %540 = vmatpush.bf16.msra.mxu1 %v1236_v57  ;;  %v1183_v17 = vld [vmem:[#allocation2] sm:$0xf]  ;;  %s1172_s11 = sshll.u32 %s2008_s9, 2  ;;  %v1208_v19 = vor.u32 %v1455_v13, %v1207_v12  ;;  %v1450_v20 = vld [vmem:[#allocation2 + $0xc] sm:$0xf0]  ;;  %v1212_v23 = vor.u32 %v1453_v14, %v1209_v15  ;;  %v1511_v37 = vld [vmem:[#allocation5 + $0xf8] sm:$0xff] }
  0x35   : > { %559 = vmatpush.bf16.msra.mxu2 %v1240_v58  ;;  %578 = vmatpush.bf16.msra.mxu3 %v1244_v62  ;;  %v1448_v21 = vld [vmem:[#allocation2 + $0x4] sm:$0xf]  ;;  %v1185_v22 = vld [vmem:[#allocation2 + $0x10] sm:$0xf0]  ;;  %v1191_v24 = vld [vmem:[#allocation2 + $0x8] sm:$0xf]  ;;  %v1184_v28 = vor.u32 %v1450_v20, %v1183_v17  ;;  %s1888_s14 = scalar_lea.vmem %s1992_s0, %s1172_s11 }
  0x36   : > { %v1451_v25 = vld [vmem:[#allocation2 + $0x14] sm:$0xf0]  ;;  %v1449_v26 = vld [vmem:[#allocation2 + $0xc] sm:$0xf]  ;;  %v1193_v27 = vld [vmem:[#allocation2 + $0x18] sm:$0xf0]  ;;  %v1188_v29 = vor.u32 %v1448_v21, %v1185_v22 }
  0x37   : > { %522 = vmatpush.bf16.msra.mxu0 %v1216_v4  ;;  %v1192_v30 = vor.u32 %v1451_v25, %v1191_v24  ;;  %v1196_v31 = vor.u32 %v1449_v26, %v1193_v27  ;;  %v1446_v33 = vld [vmem:[%s1888_s14] sm:$0xff]  ;;  %v1486_v36 = vld [vmem:[#allocation5 + $0x30] sm:$0xff]  ;;  %v1485_v40 = vld [vmem:[#allocation5 + $0x28] sm:$0xff]  ;;  %s1901_s17 = sand.u32 1, %s1743_s22   ;;  %s1514_s20 = sshll.u32 %s1819_s25, 6 }
  0x38   : > { %541 = vmatpush.bf16.msra.mxu1 %v1220_v5  ;;  %v1494_v38 = vld [vmem:[#allocation5 + $0x70] sm:$0xff]  ;;  %v1493_v42 = vld [vmem:[#allocation5 + $0x68] sm:$0xff]  ;;  %v1484_v44 = vld [vmem:[#allocation5 + $0x20] sm:$0xff]  ;;  %s1170_s18 = sshll.u32 %s1901_s17, 6  ;;  %s1040_s9 = scalar_lea.hbm %s1998_s6, %s1514_s20 }
  0x39   : > { %560 = vmatpush.bf16.msra.mxu2 %v1224_v6  ;;  %579 = vmatpush.bf16.msra.mxu3 %v1228_v10  ;;  %v1502_v39 = vld [vmem:[#allocation5 + $0xb0] sm:$0xff]  ;;  %v1447_v43 = vld [vmem:[%s1888_s14 + $0x8] sm:$0xff]  ;;  %v1492_v45 = vld [vmem:[#allocation5 + $0x60] sm:$0xff]  ;;  %s1909_s19 = scalar_lea.vmem [#allocation8], %s1170_s18  ;;  %s1043_s10 = sshll.u32 %s1040_s9, 4  ;;  %s1044_s10 = int_to_ptr.hbm [resolvable:$true] %s1043_s10 }
  0x3a   : > { %v1510_v41 = vld [vmem:[#allocation5 + $0xf0] sm:$0xff]  ;;  %v1501_v46 = vld [vmem:[#allocation5 + $0xa8] sm:$0xff]  ;;  %v1483_v48 = vld [vmem:[#allocation5 + $0x18] sm:$0xff]  ;;  %s1041_s26 = sshll.u32 %s1909_s19, 4  ;;  %s1011_s11 = scalar_lea.sflag [#allocation9], %s1901_s17  ;;  %s1042_s26 = int_to_ptr.vmem [resolvable:$true] %s1041_s26 }
  0x3b   : > { %523 = vmatpush.bf16.msra.mxu0 %v1200_v16  ;;  %v1509_v47 = vld [vmem:[#allocation5 + $0xe8] sm:$0xff]  ;;  %v1491_v49 = vld [vmem:[#allocation5 + $0x58] sm:$0xff]  ;;  %v1500_v50 = vld [vmem:[#allocation5 + $0xa0] sm:$0xff]  ;;  %s1663_s12 = sshra.s32 %s1044_s10, 4  ;;  %s1669_s16 = scalar_lea.hbm %s1998_s6, 128  ;;  %s1664_s12 = int_to_ptr.hbm [resolvable:$true] %s1663_s12 }
  0x3c   : > { %542 = vmatpush.bf16.msra.mxu1 %v1204_v18  ;;  %v1508_v51 = vld [vmem:[#allocation5 + $0xe0] sm:$0xff]  ;;  %v1482_v52 = vld [vmem:[#allocation5 + $0x10] sm:$0xff]  ;;  %v1499_v54 = vld [vmem:[#allocation5 + $0x98] sm:$0xff]  ;;  %s1665_s13 = scalar_lea.hbm %s1664_s12, 64  ;;  %p1670_p3 = scmp.lt.s32.totalorder %s1664_s12, %s1998_s6 }
  0x3d   : > { %561 = vmatpush.bf16.msra.mxu2 %v1208_v19  ;;  %580 = vmatpush.bf16.msra.mxu3 %v1212_v23  ;;  %v1490_v53 = vld [vmem:[#allocation5 + $0x50] sm:$0xff]  ;;  %v1507_v55 = vld [vmem:[#allocation5 + $0xd8] sm:$0xff]  ;;  %v1481_v56 = vld [vmem:[#allocation5 + $0x8] sm:$0xff]  ;;  %p1666_p0 = scmp.ne.s32.totalorder %s1664_s12, %s1665_s13  ;;  %p1671_p4 = scmp.lt.s32.totalorder %s1669_s16, %s1665_s13 }
  0x3e   : > { %v1489_v57 = vld [vmem:[#allocation5 + $0x48] sm:$0xff]  ;;  %v1498_v58 = vld [vmem:[#allocation5 + $0x90] sm:$0xff]  ;;  %v1480_v60 = vld [vmem:[#allocation5] sm:$0xff] }
  0x3f   : > { %524 = vmatpush.bf16.msra.mxu0 %v1184_v28  ;;  %v1506_v59 = vld [vmem:[#allocation5 + $0xd0] sm:$0xff]  ;;  %v1488_v61 = vld [vmem:[#allocation5 + $0x40] sm:$0xff]  ;;  %v1497_v62 = vld [vmem:[#allocation5 + $0x88] sm:$0xff]  ;;  %p1667_p1 = pnand %p1666_p0, %p1836_p5  ;;  %p1672_p7 = por %p1671_p4, %p1670_p3 }
  0x40   : > { %543 = vmatpush.bf16.msra.mxu1 %v1188_v29  ;;  %v1505_v63 = vld [vmem:[#allocation5 + $0xc8] sm:$0xff]  ;;  %v1496_v0 = vld [vmem:[#allocation5 + $0x80] sm:$0xff] }
  0x41   : > { %562 = vmatpush.bf16.msra.mxu2 %v1192_v30  ;;  %581 = vmatpush.bf16.msra.mxu3 %v1196_v31  ;;  %v1504_v1 = vld [vmem:[#allocation5 + $0xc0] sm:$0xff]  ;;  %p1668_p2 = pneg %p1667_p1 }
  0x42   : > { %525 = vmatmul.bf16.vlgmr.msra.gmra.mxu0 %v1446_v33  ;;  %v335_v2 = vld [vmem:[%s1994_s2] sm:$0xf] }
  0x43   : > { %925 = vmatpush.bf16.msrb.mxu0 %v1487_v32  ;;  %544 = vmatmul.bf16.vlgmr.msra.gmra.mxu1 %v1446_v33  ;;  %v1895_v3 = vperm.slane %v335_v2, 0  ;;  %v1897_v4 = vperm.slane %v335_v2, 1  ;;  %v1905_v11 = vperm.slane %v335_v2, 2  ;;  %v1907_v12 = vperm.slane %v335_v2, 3  ;;  %p1673_p8 = pnand %p1672_p7, %p1668_p2 }
  0x44   : > { %944 = vmatpush.bf16.msrb.mxu1 %v1495_v34  ;;  %563 = vmatmul.bf16.vlgmr.msra.gmra.mxu2 %v1446_v33 }
  0x45   : > { %582 = vmatmul.bf16.vlgmr.msra.gmra.mxu3 %v1446_v33  ;;  %963 = vmatpush.bf16.msrb.mxu2 %v1503_v35 }
  0x46   : > { %982 = vmatpush.bf16.msrb.mxu3 %v1511_v37 }
  0x47   : > { %926 = vmatpush.bf16.msrb.mxu0 %v1486_v36 }
  0x48   : > { %945 = vmatpush.bf16.msrb.mxu1 %v1494_v38 }
  0x49   : > { %964 = vmatpush.bf16.msrb.mxu2 %v1502_v39 }
  0x4a   : > { %983 = vmatpush.bf16.msrb.mxu3 %v1510_v41 }
  0x4b   : > { %927 = vmatpush.bf16.msrb.mxu0 %v1485_v40 }
  0x4c   : > { %946 = vmatpush.bf16.msrb.mxu1 %v1493_v42 }
  0x4d   : > { %965 = vmatpush.bf16.msrb.mxu2 %v1501_v46 }
  0x4e   : > { %984 = vmatpush.bf16.msrb.mxu3 %v1509_v47 }
  0x4f   : > { %928 = vmatpush.bf16.msrb.mxu0 %v1484_v44 }
  0x50   : > { %947 = vmatpush.bf16.msrb.mxu1 %v1492_v45 }
  0x51   : > { %966 = vmatpush.bf16.msrb.mxu2 %v1500_v50 }
  0x52   : > { %530 = vmatmul.bf16.gmra.mxu0 %v1447_v43  ;;  %985 = vmatpush.bf16.msrb.mxu3 %v1508_v51 }
  0x53   : > { %549 = vmatmul.bf16.gmra.mxu1 %v1447_v43  ;;  %929 = vmatpush.bf16.msrb.mxu0 %v1483_v48 }
  0x54   : > { %568 = vmatmul.bf16.gmra.mxu2 %v1447_v43  ;;  %948 = vmatpush.bf16.msrb.mxu1 %v1491_v49 }
  0x55   : > { %587 = vmatmul.bf16.gmra.mxu3 %v1447_v43  ;;  %967 = vmatpush.bf16.msrb.mxu2 %v1499_v54 }
  0x56   : > { %986 = vmatpush.bf16.msrb.mxu3 %v1507_v55 }
  0x57   : > { %930 = vmatpush.bf16.msrb.mxu0 %v1482_v52 }
  0x58   : > { %949 = vmatpush.bf16.msrb.mxu1 %v1490_v53 }
  0x59   : > { %968 = vmatpush.bf16.msrb.mxu2 %v1498_v58 }
  0x5a   : > { %987 = vmatpush.bf16.msrb.mxu3 %v1506_v59 }
  0x5b   : > { %931 = vmatpush.bf16.msrb.mxu0 %v1481_v56 }
  0x5c   : > { %950 = vmatpush.bf16.msrb.mxu1 %v1489_v57 }
  0x5d   : > { %969 = vmatpush.bf16.msrb.mxu2 %v1497_v62 }
  0x5e   : > { %988 = vmatpush.bf16.msrb.mxu3 %v1505_v63 }
  0x5f   : > { %932 = vmatpush.bf16.msrb.mxu0 %v1480_v60 }
  0x60   : > { %951 = vmatpush.bf16.msrb.mxu1 %v1488_v61 }
  0x61   : > { %970 = vmatpush.bf16.msrb.mxu2 %v1496_v0 }
  0x62   : > { %989 = vmatpush.bf16.msrb.mxu3 %v1504_v1 }
  0xbf   : > { %v526_v5 = vpop.f32.mrf.mxu0 }
  0xc0   : > { %v527_v6 = vadd.f32 %v526_v5, %v1895_v3  ;;  %v545_v7 = vpop.f32.mrf.mxu1 }
  0xc1   : > { %v546_v8 = vadd.f32 %v545_v7, %v1897_v4 }
  0xc2   : > { %v593_v9 = vmax.f32 %v527_v6, 0.0 }
  0xc3   : > { %v594_v10 = vmax.f32 %v546_v8, 0.0 }
  0xc5   : > { %v609_v13 = vpack.c.bf16 %v594_v10, %v593_v9 }
  0xc7   : > { %v564_v14 = vpop.f32.mrf.mxu2  ;;  %617 = vst [vmem:[%s1909_s19] sm:$0xff] %v609_v13  ;;  %v528_v17 = vpop.f32.mrf.mxu0  ;;  %v701_v28 = vunpack.c.l.b16 %v609_v13  ;;  %v702_v29 = vunpack.c.h.b16 %v609_v13 }
  0xc8   : > { %v565_v15 = vadd.f32 %v564_v14, %v1905_v11  ;;  %v583_v16 = vpop.f32.mrf.mxu3  ;;  %v529_v19 = vadd.f32 %v528_v17, %v1895_v3  ;;  %v547_v20 = vpop.f32.mrf.mxu1 }
  0xc9   : > { %v584_v18 = vadd.f32 %v583_v16, %v1907_v12  ;;  %v548_v22 = vadd.f32 %v547_v20, %v1897_v4 }
  0xca   : > { %v595_v21 = vmax.f32 %v565_v15, 0.0  ;;  %v597_v24 = vmax.f32 %v529_v19, 0.0 }
  0xcb   : > { %v596_v23 = vmax.f32 %v584_v18, 0.0  ;;  %v598_v25 = vmax.f32 %v548_v22, 0.0 }
  0xcd   : > { %v610_v26 = vpack.c.bf16 %v596_v23, %v595_v21  ;;  %v611_v27 = vpack.c.bf16 %v598_v25, %v597_v24 }
  0xcf   : > { %618 = vst [vmem:[%s1909_s19 + $0x8] sm:$0xff] %v610_v26  ;;  %v566_v30 = vpop.f32.mrf.mxu2  ;;  %v531_v33 = vpop.f32.mrf.mxu0  ;;  %v705_v34 = vunpack.c.l.b16 %v611_v27  ;;  %v706_v35 = vunpack.c.h.b16 %v611_v27  ;;  %v703_v49 = vunpack.c.l.b16 %v610_v26  ;;  %v704_v51 = vunpack.c.h.b16 %v610_v26 }
  0xd0   : > { %619 = vst [vmem:[%s1909_s19 + $0x10] sm:$0xff] %v611_v27  ;;  %v567_v31 = vadd.f32 %v566_v30, %v1905_v11  ;;  %v585_v32 = vpop.f32.mrf.mxu3  ;;  %v532_v37 = vadd.f32 %v531_v33, %v1895_v3  ;;  %v550_v38 = vpop.f32.mrf.mxu1 }
  0xd1   : > { %v586_v36 = vadd.f32 %v585_v32, %v1907_v12  ;;  %v551_v40 = vadd.f32 %v550_v38, %v1897_v4  ;;  %v717_v41 = vpack.c.b16 %v705_v34, %v701_v28  ;;  %v718_v42 = vpack.c.b16 %v706_v35, %v702_v29 }
  0xd2   : > { %v599_v39 = vmax.f32 %v567_v31, 0.0  ;;  %v601_v44 = vmax.f32 %v532_v37, 0.0 }
  0xd3   : > { %v600_v43 = vmax.f32 %v586_v36, 0.0  ;;  %v602_v45 = vmax.f32 %v551_v40, 0.0  ;;  %933 = vmatmul.bf16.vlgmr.msrb.gmra.mxu0 %v717_v41  ;;  %952 = vmatmul.bf16.vlgmr.msrb.gmra.mxu1 %v718_v42 }
  0xd5   : > { %v612_v46 = vpack.c.bf16 %v600_v43, %v599_v39  ;;  %v613_v47 = vpack.c.bf16 %v602_v45, %v601_v44 }
  0xd7   : > { %620 = vst [vmem:[%s1909_s19 + $0x18] sm:$0xff] %v612_v46  ;;  %v569_v48 = vpop.f32.mrf.mxu2  ;;  %v707_v50 = vunpack.c.l.b16 %v612_v46  ;;  %v708_v52 = vunpack.c.h.b16 %v612_v46  ;;  %v533_v55 = vpop.f32.mrf.mxu0  ;;  %v709_v6 = vunpack.c.l.b16 %v613_v47  ;;  %v710_v7 = vunpack.c.h.b16 %v613_v47 }
  0xd8   : > { %621 = vst [vmem:[%s1909_s19 + $0x20] sm:$0xff] %v613_v47  ;;  %v570_v53 = vadd.f32 %v569_v48, %v1905_v11  ;;  %v588_v54 = vpop.f32.mrf.mxu3  ;;  %v534_v57 = vadd.f32 %v533_v55, %v1895_v3  ;;  %v552_v58 = vpop.f32.mrf.mxu1 }
  0xd9   : > { %v589_v56 = vadd.f32 %v588_v54, %v1907_v12  ;;  %v719_v59 = vpack.c.b16 %v707_v50, %v703_v49  ;;  %v720_v60 = vpack.c.b16 %v708_v52, %v704_v51  ;;  %v553_v62 = vadd.f32 %v552_v58, %v1897_v4 }
  0xda   : > { %v603_v61 = vmax.f32 %v570_v53, 0.0  ;;  %v605_v0 = vmax.f32 %v534_v57, 0.0 }
  0xdb   : > { %v604_v63 = vmax.f32 %v589_v56, 0.0  ;;  %971 = vmatmul.bf16.vlgmr.msrb.gmra.mxu2 %v719_v59  ;;  %990 = vmatmul.bf16.vlgmr.msrb.gmra.mxu3 %v720_v60  ;;  %v606_v1 = vmax.f32 %v553_v62, 0.0 }
  0xdd   : > { %v614_v2 = vpack.c.bf16 %v604_v63, %v603_v61  ;;  %v615_v5 = vpack.c.bf16 %v606_v1, %v605_v0 }
  0xdf   : > { %622 = vst [vmem:[%s1909_s19 + $0x28] sm:$0xff] %v614_v2  ;;  %v571_v8 = vpop.f32.mrf.mxu2  ;;  %v713_v10 = vunpack.c.l.b16 %v615_v5  ;;  %v714_v13 = vunpack.c.h.b16 %v615_v5  ;;  %v711_v19 = vunpack.c.l.b16 %v614_v2  ;;  %v712_v21 = vunpack.c.h.b16 %v614_v2 }
  0xe0   : > { %623 = vst [vmem:[%s1909_s19 + $0x30] sm:$0xff] %v615_v5  ;;  %v572_v3 = vadd.f32 %v571_v8, %v1905_v11  ;;  %v590_v9 = vpop.f32.mrf.mxu3 }
  0xe1   : > { %v591_v4 = vadd.f32 %v590_v9, %v1907_v12  ;;  %v721_v15 = vpack.c.b16 %v713_v10, %v709_v6  ;;  %v722_v16 = vpack.c.b16 %v714_v13, %v710_v7 }
  0xe2   : > { %v607_v14 = vmax.f32 %v572_v3, 0.0 }
  0xe3   : > { %v608_v17 = vmax.f32 %v591_v4, 0.0  ;;  %938 = vmatmul.bf16.gmra.mxu0 %v721_v15  ;;  %957 = vmatmul.bf16.gmra.mxu1 %v722_v16 }
  0xe5   : > { %v616_v18 = vpack.c.bf16 %v608_v17, %v607_v14 }
  0xe7   : > { %624 = vst [vmem:[%s1909_s19 + $0x38] sm:$0xff] %v616_v18  ;;  %v715_v20 = vunpack.c.l.b16 %v616_v18  ;;  %v716_v11 = vunpack.c.h.b16 %v616_v18 }
  0xe9   : > { %v723_v22 = vpack.c.b16 %v715_v20, %v711_v19  ;;  %v724_v23 = vpack.c.b16 %v716_v11, %v712_v21 }
  0xeb   : > { %976 = vmatmul.bf16.gmra.mxu2 %v723_v22  ;;  %995 = vmatmul.bf16.gmra.mxu3 %v724_v23 }
  0xec   : > { %1676 = shalt.err (!%p1673_p8)
}
  0xed   : > { %s1759_s20 = smov 256   ;;  %s1760_s28 = smov 16   ;;  %v1588_v24 = vld [vmem:[%s1996_s4] ss:$0 sm:$0xff] }
  0xee   : > { %1524 = dma.vmem_to_hbm [thread:$0]  (%p1836_p5), %s1042_s26, 1024, %s1044_s10, %s1011_s11, %s1759_s20, %s1759_s20, %s1760_s28  }
  0xef   : > { %s1169_s12 = sshll.u32 %s1901_s17, 5  ;;  %s1512_s26 = sshll.u32 %s1819_s25, 5 }
  0xf0   : > { %s1953_s13 = scalar_lea.vmem [#allocation7], %s1169_s12  ;;  %s1022_s14 = scalar_lea.hbm %s1997_s5, %s1512_s26 }
  0xf1   : > { %s1023_s15 = sshll.u32 %s1953_s13, 4  ;;  %s1025_s16 = sshll.u32 %s1022_s14, 4  ;;  %s1024_s15 = int_to_ptr.vmem [resolvable:$true] %s1023_s15  ;;  %s1026_s16 = int_to_ptr.hbm [resolvable:$true] %s1025_s16 }
  0xf2   : > { %s1006_s25 = scalar_lea.sflag [#allocation4], %s1901_s17  ;;  %s1691_s18 = sshra.s32 %s1026_s16, 4  ;;  %s1692_s18 = int_to_ptr.hbm [resolvable:$true] %s1691_s18 }
  0xf3   : > { %s1693_s19 = scalar_lea.hbm %s1692_s18, 32  ;;  %s1697_s29 = scalar_lea.hbm %s1997_s5, 64 }
  0xf4   : > { %p1694_p9 = scmp.ne.s32.totalorder %s1692_s18, %s1693_s19  ;;  %p1698_p12 = scmp.lt.s32.totalorder %s1692_s18, %s1997_s5 }
  0xf5   : > { %p1699_p13 = scmp.lt.s32.totalorder %s1697_s29, %s1693_s19 }
  0xf6   : > { %p1695_p10 = pnand %p1694_p9, %p1836_p5 }
  0xf7   : > { %p1700_p0 = por %p1699_p13, %p1698_p12 }
  0xf8   : > { %p1696_p11 = pneg %p1695_p10 }
  0xfa   : > { %p1701_p1 = pnand %p1700_p0, %p1696_p11 }
 0x150   : > { %v934_v12 = vpop.f32.mrf.mxu0  ;;  %v953_v25 = vpop.f32.mrf.mxu1 }
 0x151   : > { %v935_v26 = vadd.f32 %v1588_v24, %v934_v12 }
 0x153   : > { %v954_v28 = vadd.f32 %v953_v25, %v935_v26 }
 0x158   : > { %v936_v27 = vpop.f32.mrf.mxu0  ;;  %v955_v32 = vpop.f32.mrf.mxu1 }
 0x159   : > { %v937_v33 = vadd.f32 %v1588_v24, %v936_v27 }
 0x15b   : > { %v956_v36 = vadd.f32 %v955_v32, %v937_v33 }
 0x15e   : > { %v972_v29 = vpop.f32.mrf.mxu2  ;;  %v991_v30 = vpop.f32.mrf.mxu3 }
 0x15f   : > { %v973_v31 = vadd.f32 %v972_v29, %v954_v28 }
 0x160   : > { %v939_v35 = vpop.f32.mrf.mxu0  ;;  %v958_v42 = vpop.f32.mrf.mxu1 }
 0x161   : > { %v992_v34 = vadd.f32 %v991_v30, %v973_v31  ;;  %v940_v40 = vadd.f32 %v1588_v24, %v939_v35 }
 0x163   : > { %1001 = vst [vmem:[%s1953_s13] sm:$0xff] %v992_v34  ;;  %v959_v43 = vadd.f32 %v958_v42, %v940_v40 }
 0x166   : > { %v974_v37 = vpop.f32.mrf.mxu2  ;;  %v993_v38 = vpop.f32.mrf.mxu3 }
 0x167   : > { %v975_v39 = vadd.f32 %v974_v37, %v956_v36 }
 0x168   : > { %v941_v44 = vpop.f32.mrf.mxu0  ;;  %v960_v50 = vpop.f32.mrf.mxu1 }
 0x169   : > { %v994_v41 = vadd.f32 %v993_v38, %v975_v39  ;;  %v942_v48 = vadd.f32 %v1588_v24, %v941_v44 }
 0x16b   : > { %1002 = vst [vmem:[%s1953_s13 + $0x8] sm:$0xff] %v994_v41  ;;  %v961_v51 = vadd.f32 %v960_v50, %v942_v48 }
 0x16e   : > { %v977_v45 = vpop.f32.mrf.mxu2  ;;  %v996_v46 = vpop.f32.mrf.mxu3 }
 0x16f   : > { %v978_v47 = vadd.f32 %v977_v45, %v959_v43 }
 0x171   : > { %v997_v49 = vadd.f32 %v996_v46, %v978_v47 }
 0x173   : > { %1003 = vst [vmem:[%s1953_s13 + $0x10] sm:$0xff] %v997_v49 }
 0x176   : > { %v979_v52 = vpop.f32.mrf.mxu2  ;;  %v998_v54 = vpop.f32.mrf.mxu3 }
 0x177   : > { %v980_v53 = vadd.f32 %v979_v52, %v961_v51 }
 0x179   : > { %v999_v55 = vadd.f32 %v998_v54, %v980_v53 }
 0x17b   : > { %1004 = vst [vmem:[%s1953_s13 + $0x18] sm:$0xff] %v999_v55 }
 0x17c   : > { %1704 = shalt.err (!%p1701_p1)
}
 0x17d   : > { %s1761_s17 = smov 128   ;;  %s1762_s13 = smov 8  }
 0x17e   : > { %1523 = dma.vmem_to_hbm [thread:$0]  (%p1836_p5), %s1024_s15, 512, %s1026_s16, %s1006_s25, %s1761_s17, %s1761_s17, %s1762_s13  }
 0x17f PF: > { %p1545_p2 = scmp.ge.s32.totalorder %s1751_s24, 2  ;;  %s1058_s26 = sand.u32 1, %s1739_s21  }
 0x180   : > { %s1059_s10 = scalar_lea.sflag [#allocation4], %s1058_s26 }
 0x181   : > { %p1535_p3 = pnand %p1545_p2, %p1840_p6 }
 0x183   : > { %p1536_p4 = pneg %p1535_p3 }
 0x185   : > { %1730 = dma.done.wait (%p1536_p4), %s1059_s10, 512  }
 0x186   : > { %1732 = vsyncadd (%p1536_p4), %s1059_s10, 4294966784  ;;  %s1069_s11 = scalar_lea.sflag [#allocation9], %s1058_s26 }
 0x187   : > { %1734 = dma.done.wait (%p1536_p4), %s1069_s11, 1024  }
 0x188   : > { %1736 = vsyncadd (%p1536_p4), %s1069_s11, 4294966272  ;;  %p22_p5 = scmp.ge.s32.totalorder %s1823_s27, 4   ;;  %s2003_s21 = smov %s1743_s22 }
 0x189   : > { %s2004_s22 = smov %s1747_s23  ;;  %s2005_s23 = smov %s1834_s30 }
 0x18a   : > { %s2006_s24 = smov %s1823_s27  ;;  %24 = sbr.rel (!%p22_p5) target bundleno = 7 (0x7), region = 101 }
 0x18f   :  { %1075 = vsyncpa [#allocation3], 1 }
 0x190   :  { %1077 = vsyncpa [#allocation3 + $0x1], 1 }
 0x191   :  { %1078 = vsyncpa [#allocation6], 1 }
 0x192   :  { %1079 = vsyncpa [#allocation4], 1 }
 0x193   :  { %1081 = vsyncpa [#allocation4 + $0x1], 1 }
 0x194   :  { %1082 = vsyncpa [#allocation9], 1 }
 0x195   :  { %1084 = vsyncpa [#allocation9 + $0x1], 1 }

</bundles_post_ra>
